<compile_context>
chip_gen: v5e
topology: v5e:2x2
jax: 0.10.0
libtpu: 0.0.40
codegen_flags: <defaults>
</compile_context>

<pallas_src>
import functools

import jax
import jax.numpy as jnp
from jax.experimental import pallas as pl
from jax.experimental.pallas import tpu as pltpu


def _round_up(x: int, m: int) -> int:
    return ((x + m - 1) // m) * m


def _sublane_granule(dtype) -> int:
    itemsize = jnp.dtype(dtype).itemsize
    if itemsize >= 4:
        return 8
    if itemsize == 2:
        return 16
    return 32


def prepare_vgg_classifier_params(weight, bias, operand_dtype=jnp.float32):
    """One-off parameter prep (do this at model setup, not per forward call).

    weight: [num_classes, feat_dim]  (PyTorch nn.Linear layout)
    bias:   [num_classes]
    Returns (w_t_pad [feat_dim, N_pad] operand_dtype, b_pad [1, N_pad] f32).
    """
    N, D = weight.shape
    N_pad = _round_up(N, 128)
    w_t_pad = jnp.zeros((D, N_pad), jnp.float32).at[:, :N].set(
        weight.astype(jnp.float32).T
    ).astype(operand_dtype)
    b_pad = jnp.zeros((1, N_pad), jnp.float32).at[0, :N].set(bias.astype(jnp.float32))
    return w_t_pad, b_pad


def linear_kernel(x_ref, w_ref, b_ref, o_ref):
    # x_ref: [bm, D], w_ref: [D, N_pad], b_ref: [1, N_pad], o_ref: [bm, N_pad]
    acc = jnp.dot(x_ref[...], w_ref[...], preferred_element_type=jnp.float32)
    o_ref[...] = (acc + b_ref[...]).astype(o_ref.dtype)


@functools.partial(
    jax.jit,
    static_argnames=("num_classes", "bm", "out_dtype", "return_padded"),
)
def vgg_linear_classifier(x, w_t_pad, b_pad, *, num_classes,
                          bm: int = 1024, out_dtype=jnp.float32,
                          return_padded: bool = False):
    """Forward pass of VGGLinearClassifier.fc: out = x @ weight.T + bias.

    x:        [B, feat_dim]           (f32 or bf16 -- pass producer's dtype)
    w_t_pad:  [feat_dim, N_pad]       from prepare_vgg_classifier_params
    b_pad:    [1, N_pad] f32          from prepare_vgg_classifier_params
    returns   [B, num_classes] out_dtype (or [B, N_pad] if return_padded).
    """
    B, D = x.shape
    D_w, N_pad = w_t_pad.shape
    assert D_w == D

    # Batch tile: multiple of the operand's packed-sublane granule.
    granule = _sublane_granule(x.dtype)
    bm_eff = min(bm, _round_up(B, granule))
    bm_eff = max(_round_up(bm_eff, granule), granule)

    # Nudge the step count to be even so v7x's two TCs split the batch evenly.
    steps = -(-B // bm_eff)
    if steps > 1 and steps % 2 == 1:
        cand = max(_round_up(-(-B // (steps + 1)), granule), granule)
        if (-(-B // cand)) % 2 == 0:
            bm_eff = cand
            steps = -(-B // bm_eff)

    grid = (steps,)

    x_bytes = jnp.dtype(x.dtype).itemsize
    w_bytes = jnp.dtype(w_t_pad.dtype).itemsize
    o_bytes = jnp.dtype(out_dtype).itemsize

    cost = pl.CostEstimate(
        flops=2 * B * D * N_pad,
        transcendentals=0,
        bytes_accessed=x_bytes * B * D + w_bytes * D * N_pad + o_bytes * B * N_pad,
    )

    # VMEM footprint: double-buffered x + out tiles, resident weight + bias.
    est_vmem = (2 * bm_eff * D * x_bytes
                + 2 * bm_eff * N_pad * o_bytes
                + D * N_pad * w_bytes
                + N_pad * 4)
    vmem_limit = None
    if est_vmem > 12 * 1024 * 1024:
        vmem_limit = min(est_vmem + (2 << 20), 96 * 1024 * 1024)

    out = pl.pallas_call(
        linear_kernel,
        out_shape=jax.ShapeDtypeStruct((B, N_pad), out_dtype),
        grid_spec=pltpu.PrefetchScalarGridSpec(
            num_scalar_prefetch=0,
            grid=grid,
            in_specs=[
                # x: one batch tile per grid step (pipelined / double-buffered).
                pl.BlockSpec((bm_eff, D), lambda i: (i, 0)),
                # weight / bias: whole-array blocks, VMEM-resident across steps.
                pl.BlockSpec((D, N_pad), lambda i: (0, 0)),
                pl.BlockSpec((1, N_pad), lambda i: (0, 0)),
            ],
            out_specs=pl.BlockSpec((bm_eff, N_pad), lambda i: (i, 0)),
        ),
        compiler_params=pltpu.CompilerParams(
            dimension_semantics=("parallel",),  # batch tiles split across TCs (v7x)
            vmem_limit_bytes=vmem_limit,
        ),
        cost_estimate=cost,
    )(x, w_t_pad, b_pad)

    if return_padded:
        return out
    return out[:, :num_classes]


if __name__ == "__main__":
    # VGGLinearClassifier(encoder_name='vgg16', num_classes=9):
    #   feat_dim = model_dict['vgg16'][1] = 512, fc = nn.Linear(512, 9)
    feat_dim = 512
    num_classes = 9
    batch = 2

    key = jax.random.PRNGKey(0)
    kx, kw, kb = jax.random.split(key, 3)

    x = jax.random.normal(kx, (batch, feat_dim), dtype=jnp.float32)
    weight = 0.01 * jax.random.normal(kw, (num_classes, feat_dim), dtype=jnp.float32)
    bias = 0.01 * jax.random.normal(kb, (num_classes,), dtype=jnp.float32)

    # ---- f32 operand path (tight tolerance) ------------------------------
    w_t_pad, b_pad = prepare_vgg_classifier_params(weight, bias)  # one-off setup
    out = vgg_linear_classifier(x, w_t_pad, b_pad, num_classes=num_classes)
    out = jax.block_until_ready(out)

    ref = x @ weight.T + bias
    assert out.shape == (batch, num_classes)
    assert jnp.allclose(out, ref, atol=1e-5, rtol=1e-5)

    # Larger batch that is not a multiple of the tile -> ragged last block.
    big_b = 1111
    xb = jax.random.normal(jax.random.PRNGKey(1), (big_b, feat_dim), dtype=jnp.float32)
    out_big = jax.block_until_ready(
        vgg_linear_classifier(xb, w_t_pad, b_pad, num_classes=num_classes)
    )
    ref_big = xb @ weight.T + bias
    assert out_big.shape == (big_b, num_classes)
    assert jnp.allclose(out_big, ref_big, atol=1e-4, rtol=1e-4)

    # ---- bf16 operand path (f32 accumulate, looser tolerance) ------------
    w_t_bf, b_pad_bf = prepare_vgg_classifier_params(
        weight, bias, operand_dtype=jnp.bfloat16
    )
    xb_bf = xb.astype(jnp.bfloat16)  # stands in for a bf16-emitting producer
    out_bf = jax.block_until_ready(
        vgg_linear_classifier(xb_bf, w_t_bf, b_pad_bf, num_classes=num_classes)
    )
    assert out_bf.shape == (big_b, num_classes)
    assert jnp.allclose(out_bf, ref_big, atol=3e-2, rtol=3e-2)

    # ---- padded / bf16-output slab path (consumer reads first 9 lanes) ---
    out_slab = jax.block_until_ready(
        vgg_linear_classifier(xb, w_t_pad, b_pad, num_classes=num_classes,
                              out_dtype=jnp.bfloat16, return_padded=True)
    )
    assert out_slab.shape == (big_b, 128)
    assert jnp.allclose(out_slab[:, :num_classes].astype(jnp.float32),
                        ref_big, atol=3e-2, rtol=3e-2)

    print("KERNEL_OK")
</pallas_src>

<mosaic_0001>
module attributes {stable_mosaic.version = 11 : i64} {
  func.func @linear_kernel(%arg0: i32, %arg1: memref<8x512xf32, #tpu.memory_space<vmem>>, %arg2: memref<512x128xf32, #tpu.memory_space<vmem>>, %arg3: memref<1x128xf32, #tpu.memory_space<vmem>>, %arg4: memref<8x128xf32, #tpu.memory_space<vmem>>) attributes {dimension_semantics = [#tpu.dimension_semantics<parallel>], iteration_bounds = array<i64: 1>, scalar_prefetch = 0 : i64, scratch_operands = 0 : i64, tpu.core_type = #tpu.core_type<tc>, window_params = [{transform_indices = @transform_0, window_bounds = array<i64: 8, 512>}, {pipeline_mode = #tpu.pipeline_mode<synchronous>, transform_indices = @transform_1, window_bounds = array<i64: 512, 128>}, {pipeline_mode = #tpu.pipeline_mode<synchronous>, transform_indices = @transform_2, window_bounds = array<i64: 1, 128>}, {transform_indices = @transform_3, window_bounds = array<i64: 8, 128>}]} {
    %c0 = arith.constant 0 : index
    %c0_0 = arith.constant 0 : index
    %0 = vector.load %arg1[%c0, %c0_0] : memref<8x512xf32, #tpu.memory_space<vmem>>, vector<8x512xf32>
    %c0_1 = arith.constant 0 : index
    %c0_2 = arith.constant 0 : index
    %1 = vector.load %arg2[%c0_1, %c0_2] : memref<512x128xf32, #tpu.memory_space<vmem>>, vector<512x128xf32>
    %cst = arith.constant dense<0.000000e+00> : vector<8x128xf32>
    %2 = tpu.matmul %0, %1, %cst {dimension_numbers = #tpu.dot_dimension_numbers<[1], [0], [0], [1], [0, 0, 1, 1], [], []>} : vector<8x512xf32>, vector<512x128xf32>, vector<8x128xf32> -> vector<8x128xf32>
    %c0_3 = arith.constant 0 : index
    %c0_4 = arith.constant 0 : index
    %3 = vector.load %arg3[%c0_3, %c0_4] : memref<1x128xf32, #tpu.memory_space<vmem>>, vector<1x128xf32>
    %4 = vector.broadcast %3 : vector<1x128xf32> to vector<8x128xf32>
    %5 = arith.addf %2, %4 : vector<8x128xf32>
    %c0_5 = arith.constant 0 : index
    %c0_6 = arith.constant 0 : index
    %6 = vector.load %arg4[%c0_5, %c0_6] : memref<8x128xf32, #tpu.memory_space<vmem>>, vector<8x128xf32>
    tpu.vector_store %arg4[%c0_5, %c0_6], %5 {strides = array<i32>} : memref<8x128xf32, #tpu.memory_space<vmem>>, vector<8x128xf32>,
    return
  }
  func.func @transform_0(%arg0: i32) -> (i32, i32) {
    %c0_i32 = arith.constant 0 : i32
    %c0_i32_0 = arith.constant 0 : i32
    return %arg0, %c0_i32 : i32, i32
  }
  func.func @transform_1(%arg0: i32) -> (i32, i32) {
    %c0_i32 = arith.constant 0 : i32
    %c0_i32_0 = arith.constant 0 : i32
    %c0_i32_1 = arith.constant 0 : i32
    return %c0_i32, %c0_i32_0 : i32, i32
  }
  func.func @transform_2(%arg0: i32) -> (i32, i32) {
    %c0_i32 = arith.constant 0 : i32
    %c0_i32_0 = arith.constant 0 : i32
    %c0_i32_1 = arith.constant 0 : i32
    return %c0_i32, %c0_i32_0 : i32, i32
  }
  func.func @transform_3(%arg0: i32) -> (i32, i32) {
    %c0_i32 = arith.constant 0 : i32
    %c0_i32_0 = arith.constant 0 : i32
    return %arg0, %c0_i32 : i32, i32
  }
}

</mosaic_0001>

<bundles_post_ra>
// kernel: vgg_linear_classifier.1
= control target key start
LH: loop header
LB: loop body
LE: loop exit
PB: predicated region body
PF: predicated region fallthrough
CT: control target
= control target key end

     0   :  { %8 = vsyncpa [#allocation3], 0  ;;  %s364_s0 = inlined_call_operand.hbm [shape: f32[2,512], index: 0, kind: input, shape index: {}]   ;;  %s365_s1 = inlined_call_operand.hbm [shape: f32[512,128], index: 1, kind: input, shape index: {}]   ;;  %s366_s2 = inlined_call_operand.vmem [shape: f32[1,128], index: 2, kind: input, shape index: {}]   ;;  %s367_s3 = inlined_call_operand.hbm [shape: f32[2,128], index: 3, kind: output, shape index: {}]  }
   0x1   :  { %9 = vsyncpa [#allocation6], 0 }
   0x2   :  { %10 = vsyncpa [#allocation4], 0 }
   0x3   :  { %14 = vsyncadd [#allocation3], 384  ;;  %s15_s14 = sshll.u32 %s364_s0, 4  ;;  %s325_s15 = smov [#allocation2]   ;;  %s16_s14 = int_to_ptr.hbm [resolvable:$true] %s15_s14 }
   0x4   :  { %s17_s16 = sshll.u32 %s325_s15, 4  ;;  %s28_s19 = sshll.u32 %s365_s1, 4  ;;  %s18_s16 = int_to_ptr.vmem [resolvable:$true] %s17_s16  ;;  %s29_s19 = int_to_ptr.hbm [resolvable:$true] %s28_s19 }
   0x5   :  { %s326_s20 = smov 128   ;;  %s327_s21 = smov 8  }
   0x6   :  { %23 = dma.hbm_to_vmem [thread:$0]  %s16_s14, 128, %s18_s16, [#allocation3], %s326_s20, %s326_s20, %s327_s21  }
   0x7   :  { %s328_s22 = smov [#allocation5]  }
   0x8   :  { %s30_s23 = sshll.u32 %s328_s22, 4  ;;  %s31_s23 = int_to_ptr.vmem [resolvable:$true] %s30_s23 }
   0x9   :  { %36 = dma.hbm_to_vmem [thread:$0]  %s29_s19, 8192, %s31_s23, [#allocation6], %s326_s20, %s326_s20, %s327_s21  }
   0xa   :  { %319 = dma.done.wait [#allocation3], 512  }
   0xb   :  { %320 = vsyncadd [#allocation3], 4294966784 }
   0xc   :  { %321 = dma.done.wait [#allocation6], 8192  }
   0xd   :  { %322 = vsyncadd [#allocation6], 4294959104  ;;  %v98_v0 = vld [vmem:[#allocation5 + $0x178] sm:$0xff]  ;;  %v97_v2 = vld [vmem:[#allocation5 + $0x170] sm:$0xff] }
   0xe   :  { %v66_v1 = vld [vmem:[#allocation5 + $0x78] sm:$0xff]  ;;  %178 = vmatpush.msra.mxu2 %v98_v0  ;;  %v65_v4 = vld [vmem:[#allocation5 + $0x70] sm:$0xff]  ;;  %v96_v6 = vld [vmem:[#allocation5 + $0x168] sm:$0xff] }
   0xf   :  { %138 = vmatpush.msra.mxu0 %v66_v1  ;;  %v114_v3 = vld [vmem:[#allocation5 + $0x1f8] sm:$0xff]  ;;  %v113_v7 = vld [vmem:[#allocation5 + $0x1f0] sm:$0xff]  ;;  %v64_v8 = vld [vmem:[#allocation5 + $0x68] sm:$0xff] }
  0x10   :  { %v82_v5 = vld [vmem:[#allocation5 + $0xf8] sm:$0xff]  ;;  %198 = vmatpush.msra.mxu3 %v114_v3  ;;  %179 = vmatpush.msra.mxu2 %v97_v2  ;;  %v81_v9 = vld [vmem:[#allocation5 + $0xf0] sm:$0xff]  ;;  %v112_v10 = vld [vmem:[#allocation5 + $0x1e8] sm:$0xff] }
  0x11   :  { %158 = vmatpush.msra.mxu1 %v82_v5  ;;  %139 = vmatpush.msra.mxu0 %v65_v4  ;;  %v95_v11 = vld [vmem:[#allocation5 + $0x160] sm:$0xff]  ;;  %v80_v13 = vld [vmem:[#allocation5 + $0xe8] sm:$0xff]  ;;  %v94_v16 = vld [vmem:[#allocation5 + $0x158] sm:$0xff] }
  0x12   :  { %199 = vmatpush.msra.mxu3 %v113_v7  ;;  %v63_v12 = vld [vmem:[#allocation5 + $0x60] sm:$0xff]  ;;  %180 = vmatpush.msra.mxu2 %v96_v6  ;;  %v62_v17 = vld [vmem:[#allocation5 + $0x58] sm:$0xff]  ;;  %v93_v20 = vld [vmem:[#allocation5 + $0x150] sm:$0xff] }
  0x13   :  { %159 = vmatpush.msra.mxu1 %v81_v9  ;;  %140 = vmatpush.msra.mxu0 %v64_v8  ;;  %v111_v14 = vld [vmem:[#allocation5 + $0x1e0] sm:$0xff]  ;;  %v110_v18 = vld [vmem:[#allocation5 + $0x1d8] sm:$0xff]  ;;  %v61_v21 = vld [vmem:[#allocation5 + $0x50] sm:$0xff] }
  0x14   :  { %v79_v15 = vld [vmem:[#allocation5 + $0xe0] sm:$0xff]  ;;  %200 = vmatpush.msra.mxu3 %v112_v10  ;;  %181 = vmatpush.msra.mxu2 %v95_v11  ;;  %v78_v19 = vld [vmem:[#allocation5 + $0xd8] sm:$0xff]  ;;  %v109_v22 = vld [vmem:[#allocation5 + $0x1d0] sm:$0xff] }
  0x15   :  { %160 = vmatpush.msra.mxu1 %v80_v13  ;;  %141 = vmatpush.msra.mxu0 %v63_v12  ;;  %v77_v23 = vld [vmem:[#allocation5 + $0xd0] sm:$0xff]  ;;  %v92_v24 = vld [vmem:[#allocation5 + $0x148] sm:$0xff]  ;;  %v91_v28 = vld [vmem:[#allocation5 + $0x140] sm:$0xff] }
  0x16   :  { %201 = vmatpush.msra.mxu3 %v111_v14  ;;  %182 = vmatpush.msra.mxu2 %v94_v16  ;;  %v60_v25 = vld [vmem:[#allocation5 + $0x48] sm:$0xff]  ;;  %v59_v29 = vld [vmem:[#allocation5 + $0x40] sm:$0xff]  ;;  %v90_v32 = vld [vmem:[#allocation5 + $0x138] sm:$0xff] }
  0x17   :  { %161 = vmatpush.msra.mxu1 %v79_v15  ;;  %142 = vmatpush.msra.mxu0 %v62_v17  ;;  %v108_v26 = vld [vmem:[#allocation5 + $0x1c8] sm:$0xff]  ;;  %v107_v30 = vld [vmem:[#allocation5 + $0x1c0] sm:$0xff]  ;;  %v58_v33 = vld [vmem:[#allocation5 + $0x38] sm:$0xff] }
  0x18   :  { %202 = vmatpush.msra.mxu3 %v110_v18  ;;  %183 = vmatpush.msra.mxu2 %v93_v20  ;;  %v76_v27 = vld [vmem:[#allocation5 + $0xc8] sm:$0xff]  ;;  %v75_v31 = vld [vmem:[#allocation5 + $0xc0] sm:$0xff]  ;;  %v106_v34 = vld [vmem:[#allocation5 + $0x1b8] sm:$0xff] }
  0x19   :  { %162 = vmatpush.msra.mxu1 %v78_v19  ;;  %143 = vmatpush.msra.mxu0 %v61_v21  ;;  %v74_v35 = vld [vmem:[#allocation5 + $0xb8] sm:$0xff]  ;;  %v89_v36 = vld [vmem:[#allocation5 + $0x130] sm:$0xff]  ;;  %v88_v40 = vld [vmem:[#allocation5 + $0x128] sm:$0xff] }
  0x1a   :  { %203 = vmatpush.msra.mxu3 %v109_v22  ;;  %184 = vmatpush.msra.mxu2 %v92_v24  ;;  %v57_v37 = vld [vmem:[#allocation5 + $0x30] sm:$0xff]  ;;  %v56_v41 = vld [vmem:[#allocation5 + $0x28] sm:$0xff]  ;;  %v87_v42 = vld [vmem:[#allocation5 + $0x120] sm:$0xff] }
  0x1b   :  { %163 = vmatpush.msra.mxu1 %v77_v23  ;;  %144 = vmatpush.msra.mxu0 %v60_v25  ;;  %v105_v38 = vld [vmem:[#allocation5 + $0x1b0] sm:$0xff]  ;;  %v104_v43 = vld [vmem:[#allocation5 + $0x1a8] sm:$0xff]  ;;  %v55_v44 = vld [vmem:[#allocation5 + $0x20] sm:$0xff] }
  0x1c   :  { %204 = vmatpush.msra.mxu3 %v108_v26  ;;  %185 = vmatpush.msra.mxu2 %v91_v28  ;;  %v73_v39 = vld [vmem:[#allocation5 + $0xb0] sm:$0xff]  ;;  %v72_v45 = vld [vmem:[#allocation5 + $0xa8] sm:$0xff]  ;;  %v47_v46 = vld [vmem:[#allocation2] sm:$0xff] }
  0x1d   :  { %164 = vmatpush.msra.mxu1 %v76_v27  ;;  %145 = vmatpush.msra.mxu0 %v59_v29  ;;  %v48_v47 = vld [vmem:[#allocation2 + $0x8] sm:$0xff]  ;;  %v49_v48 = vld [vmem:[#allocation2 + $0x10] sm:$0xff]  ;;  %v103_v49 = vld [vmem:[#allocation5 + $0x1a0] sm:$0xff]  ;;  %123 = vst [vmem:[#allocation1] ss:$4 sm:$0xff] %v47_v46 }
  0x1e   :  { %205 = vmatpush.msra.mxu3 %v107_v30  ;;  %186 = vmatpush.msra.mxu2 %v90_v32  ;;  %v71_v50 = vld [vmem:[#allocation5 + $0xa0] sm:$0xff]  ;;  %v50_v51 = vld [vmem:[#allocation2 + $0x18] sm:$0xff]  ;;  %125 = vst [vmem:[#allocation1 + $0x1] ss:$4 sm:$0xff] %v48_v47  ;;  %v85_v56 = vld [vmem:[#allocation5 + $0x110] sm:$0xff] }
  0x1f   :  { %165 = vmatpush.msra.mxu1 %v75_v31  ;;  %146 = vmatpush.msra.mxu0 %v58_v33  ;;  %v86_v52 = vld [vmem:[#allocation5 + $0x118] sm:$0xff]  ;;  %127 = vst [vmem:[#allocation1 + $0x2] ss:$4 sm:$0xff] %v49_v48  ;;  %v53_v57 = vld [vmem:[#allocation5 + $0x10] sm:$0xff]  ;;  %v84_v60 = vld [vmem:[#allocation5 + $0x108] sm:$0xff] }
  0x20   :  { %206 = vmatpush.msra.mxu3 %v106_v34  ;;  %187 = vmatpush.msra.mxu2 %v89_v36  ;;  %v54_v53 = vld [vmem:[#allocation5 + $0x18] sm:$0xff]  ;;  %129 = vst [vmem:[#allocation1 + $0x3] ss:$4 sm:$0xff] %v50_v51  ;;  %v101_v58 = vld [vmem:[#allocation5 + $0x190] sm:$0xff]  ;;  %v52_v61 = vld [vmem:[#allocation5 + $0x8] sm:$0xff] }
  0x21   :  { %166 = vmatpush.msra.mxu1 %v74_v35  ;;  %147 = vmatpush.msra.mxu0 %v57_v37  ;;  %v102_v54 = vld [vmem:[#allocation5 + $0x198] sm:$0xff]  ;;  %v69_v59 = vld [vmem:[#allocation5 + $0x90] sm:$0xff]  ;;  %v100_v62 = vld [vmem:[#allocation5 + $0x188] sm:$0xff] }
  0x22   :  { %207 = vmatpush.msra.mxu3 %v105_v38  ;;  %188 = vmatpush.msra.mxu2 %v88_v40  ;;  %v70_v55 = vld [vmem:[#allocation5 + $0x98] sm:$0xff]  ;;  %v68_v63 = vld [vmem:[#allocation5 + $0x88] sm:$0xff]  ;;  %v83_v0 = vld [vmem:[#allocation5 + $0x100] sm:$0xff] }
  0x23   :  { %167 = vmatpush.msra.mxu1 %v73_v39  ;;  %148 = vmatpush.msra.mxu0 %v56_v41  ;;  %v51_v1 = vld [vmem:[#allocation5] sm:$0xff]  ;;  %v246_v8 = vld [vmem:[%s366_s2] ss:$0 sm:$0xff] }
  0x24   :  { %208 = vmatpush.msra.mxu3 %v104_v43  ;;  %189 = vmatpush.msra.mxu2 %v87_v42  ;;  %v99_v2 = vld [vmem:[#allocation5 + $0x180] sm:$0xff] }
  0x25   :  { %168 = vmatpush.msra.mxu1 %v72_v45  ;;  %149 = vmatpush.msra.mxu0 %v55_v44  ;;  %v67_v3 = vld [vmem:[#allocation5 + $0x80] sm:$0xff] }
  0x26   :  { %209 = vmatpush.msra.mxu3 %v103_v49  ;;  %190 = vmatpush.msra.mxu2 %v86_v52 }
  0x27   :  { %169 = vmatpush.msra.mxu1 %v71_v50  ;;  %150 = vmatpush.msra.mxu0 %v54_v53  ;;  %v132_v4 = vld.sshfl [vmem:[#allocation1 + $0x10] sm:$0xff pattern:$0x73625140]  ;;  %v130_v5 = vld.sshfl [vmem:[#allocation1] sm:$0xff pattern:$0x73625140] }
  0x28   :  { %210 = vmatpush.msra.mxu3 %v102_v54  ;;  %191 = vmatpush.msra.mxu2 %v85_v56  ;;  %v133_v6 = vld.sshfl [vmem:[#allocation1 + $0x18] sm:$0xff pattern:$0x73625140]  ;;  %v131_v7 = vld.sshfl [vmem:[#allocation1 + $0x8] sm:$0xff pattern:$0x73625140] }
  0x29   :  { %170 = vmatpush.msra.mxu1 %v70_v55  ;;  %151 = vmatpush.msra.mxu0 %v53_v57 }
  0x2a   :  { %211 = vmatpush.msra.mxu3 %v101_v58  ;;  %192 = vmatpush.msra.mxu2 %v84_v60 }
  0x2b   :  { %171 = vmatpush.msra.mxu1 %v69_v59  ;;  %152 = vmatpush.msra.mxu0 %v52_v61 }
  0x2c   :  { %212 = vmatpush.msra.mxu3 %v100_v62  ;;  %193 = vmatpush.msra.mxu2 %v83_v0 }
  0x2d   :  { %172 = vmatpush.msra.mxu1 %v68_v63  ;;  %153 = vmatpush.msra.mxu0 %v51_v1 }
  0x2e   :  { %194 = vmatmul.f32.vlgmr.msra.gmra.mxu2 %v132_v4  ;;  %213 = vmatpush.msra.mxu3 %v99_v2 }
  0x2f   :  { %154 = vmatmul.f32.vlgmr.msra.gmra.mxu0 %v130_v5  ;;  %214 = vmatmul.f32.vlgmr.msra.gmra.mxu3 %v133_v6 }
  0x30   :  { %173 = vmatpush.msra.mxu1 %v67_v3 }
  0x31   :  { %174 = vmatmul.f32.vlgmr.msra.gmra.mxu1 %v131_v7 }
  0xac   :  { %v155_v9 = vpop.f32.mrf.mxu0 }
  0xad   :  { %v156_v10 = vadd.f32 %v246_v8, %v155_v9 }
  0xae   :  { %v175_v11 = vpop.f32.mrf.mxu1 }
  0xaf   :  { %v176_v12 = vadd.f32 %v175_v11, %v156_v10 }
  0xb1   :  { %v195_v13 = vpop.f32.mrf.mxu2 }
  0xb2   :  { %v196_v14 = vadd.f32 %v195_v13, %v176_v12  ;;  %v215_v15 = vpop.f32.mrf.mxu3 }
  0xb4   :  { %v216_v16 = vadd.f32 %v215_v15, %v196_v14 }
  0xb6   :  { %218 = vst [vmem:[#allocation7] sm:$0xff] %v216_v16 }
  0xb7   :  { %222 = vsyncadd [#allocation4], 96  ;;  %s225_s26 = sshll.u32 %s367_s3, 4  ;;  %s329_s27 = smov [#allocation7]   ;;  %s226_s26 = int_to_ptr.hbm [resolvable:$true] %s225_s26 }
  0xb8   :  { %s223_s28 = sshll.u32 %s329_s27, 4  ;;  %s330_s29 = smov 32   ;;  %s224_s28 = int_to_ptr.vmem [resolvable:$true] %s223_s28 }
  0xb9   :  { %s331_s2 = smov 2  }
  0xba   :  { %231 = dma.vmem_to_hbm [thread:$0]  %s224_s28, 32, %s226_s26, [#allocation4], %s330_s29, %s330_s29, %s331_s2  }
  0xbb   :  { %323 = dma.done.wait [#allocation4], 128  }
  0xbc   :  { %324 = vsyncadd [#allocation4], 4294967168 }
  0xbd   :  { %236 = vsyncpa [#allocation3], 1 }
  0xbe   :  { %237 = vsyncpa [#allocation6], 1 }
  0xbf   :  { %238 = vsyncpa [#allocation4], 1 }

</bundles_post_ra>
